<compile_context>
chip_gen: v7x
topology: tpu7x:2x2x1
jax: 0.10.0
libtpu: 0.0.40
codegen_flags: <defaults>
</compile_context>

<pallas_src>
import jax
import jax.numpy as jnp
from jax.experimental import pallas as pl
from jax.experimental.pallas import tpu as pltpu

B = 2            # batch
D_IN = 4         # state dimension (affine1: 4 -> 128)
H = 128          # hidden width (also the lane-dense packed output width)
N_CAPS = 32      # number of input capsules (value_head: 128 -> 32)
D_INP = 4        # capsule input dim
D_OUT = 2        # capsule output dim (n_out = 1)
EPS = 1e-5


def policy_kernel(x_ref, w1_ref, b1_ref, wcat_ref, bcat_ref, beta_ref, out_ref):
    b_dim, h_dim = out_ref.shape
    x = x_ref[...]                                               # [B, 4]

    # ---- affine1 + ReLU on the VPU (K = 4: not worth an MXU fill/drain) -----
    h = x[:, 0:1] * w1_ref[0:1, :]
    for d in range(1, x_ref.shape[1]):
        h = h + x[:, d:d + 1] * w1_ref[d:d + 1, :]
    h = jnp.maximum(h + b1_ref[...], 0.0)                        # [B, 128]

    # ---- fused heads: [a_inp | votes(out=0) | votes(out=1) | pad] ------------
    # wcat is [128, 128]: cols 0:32 = value_head, 32:96 = action_head folded
    # with the shared routing weight, 96:128 = zero pad (lane-dense MXU pass).
    y = jnp.dot(h, wcat_ref[...], preferred_element_type=jnp.float32) + bcat_ref[...]
    a_inp = y[:, 0:N_CAPS]                                       # [B, 32]
    v0 = y[:, N_CAPS:2 * N_CAPS]                                 # votes, out dim 0
    v1 = y[:, 2 * N_CAPS:3 * N_CAPS]                             # votes, out dim 1

    # ---- Heinsen routing, n_out == 1 closed form (exact) ---------------------
    f_a = 0.5 * (jnp.tanh(0.5 * a_inp) + 1.0)                    # stable sigmoid (EUP)
    d_sum = jnp.sum(f_a, axis=-1, keepdims=True)                 # [B, 1]
    beta_use = beta_ref[0, 0]                                    # scalar read from SMEM
    a_out = beta_use * d_sum                                     # beta_ign term vanishes
    inv = pl.reciprocal(d_sum + EPS, approx=True)
    mu0 = jnp.sum(f_a * v0, axis=-1, keepdims=True) * inv        # [B, 1]
    mu1 = jnp.sum(f_a * v1, axis=-1, keepdims=True) * inv        # [B, 1]

    # ---- softmax over the 2 action logits ------------------------------------
    m = jnp.maximum(mu0, mu1)
    e0 = jnp.exp(mu0 - m)
    e1 = jnp.exp(mu1 - m)
    inv_den = pl.reciprocal(e0 + e1, approx=True)
    p0 = e0 * inv_den
    p1 = e1 * inv_den

    # ---- single lane-dense output write: [a_out | mu0 | mu1 | p0 | p1 | 0...] -
    lane = jax.lax.broadcasted_iota(jnp.int32, (b_dim, h_dim), 1)
    packed = jnp.where(lane == 0, a_out, 0.0)
    packed = jnp.where(lane == 1, mu0, packed)
    packed = jnp.where(lane == 2, mu1, packed)
    packed = jnp.where(lane == 3, p0, packed)
    packed = jnp.where(lane == 4, p1, packed)
    out_ref[...] = packed


@jax.jit
def policy_forward_raw(x, w1, b1, wcat, bcat, beta):
    vmem = pl.BlockSpec(memory_space=pltpu.MemorySpace.VMEM)
    smem = pl.BlockSpec(memory_space=pltpu.MemorySpace.SMEM)
    packed = pl.pallas_call(
        policy_kernel,
        out_shape=jax.ShapeDtypeStruct((x.shape[0], H), jnp.float32),
        in_specs=[vmem, vmem, vmem, vmem, vmem, smem],
        out_specs=vmem,
    )(x, w1, b1, wcat, bcat, beta)
    a_out = packed[:, 0:1]                        # state capsule score a_out   [B, 1]
    mu = packed[:, 1:3]                           # routed action capsule mu    [B, 2]
    prob = packed[:, 3:5]                         # softmax(action capsule)     [B, 2]
    return a_out, mu, prob


def policy_forward(x, kernel_params):
    """Reproduces Policy.forward: returns (action_prob, state_capsules)."""
    a_out, _, prob = policy_forward_raw(x, *kernel_params)
    batch = x.shape[0]
    # state_caps.max(-1): n_out == 1 so values = a_out[:, 0], indices = zeros(B)
    state_val = a_out[:, 0]                                          # [B]
    # action_caps[:, idx, :, :].squeeze() with idx = zeros(B) -> [B, B, 2];
    # row p is mu_out[p]; softmax over last dim -> broadcast of `prob`.
    action_cap_prob = jnp.broadcast_to(prob[:, None, :], (batch, batch, D_OUT))
    # The single Routing layer runs once in the loop and the same post-processing
    # repeats after the loop -> two identical list entries.
    action_prob = [action_cap_prob, action_cap_prob]
    state_capsules = [state_val, state_val]
    return action_prob, state_capsules


def make_params(key):
    """Torch-equivalent parameters (Linear weights stored as [in, out])."""
    ks = jax.random.split(key, 7)
    w1 = 0.1 * jax.random.normal(ks[0], (D_IN, H), jnp.float32)
    b1 = 0.1 * jax.random.normal(ks[1], (1, H), jnp.float32)
    wa = 0.1 * jax.random.normal(ks[2], (H, H), jnp.float32)
    ba = 0.1 * jax.random.normal(ks[3], (1, H), jnp.float32)
    wv = 0.1 * jax.random.normal(ks[4], (H, N_CAPS), jnp.float32)
    bv = 0.1 * jax.random.normal(ks[5], (1, N_CAPS), jnp.float32)
    # Routing params: shared weight W [d_inp, d_out] (torch init: normal()/d_inp),
    # bias B [n_out=1, d_cov=1, d_out] (zeros), beta_use scalar.
    wr = jax.random.normal(ks[6], (D_INP, D_OUT), jnp.float32) / D_INP
    br = jnp.zeros((D_OUT,), jnp.float32)
    beta_use = jnp.full((1, 1), 0.1, jnp.float32)   # nonzero for a non-degenerate demo
    return (w1, b1, wa, ba, wv, bv, wr, br, beta_use)


def fold_params(params):
    """Offline folding: action_head @ routing weight, heads concatenated lane-dense."""
    w1, b1, wa, ba, wv, bv, wr, br, beta_use = params
    # Votes: V[b, 32*o + i] = sum_d (h @ wa + ba)[b, 4*i + d] * wr[d, o] + br[o]
    #   =>  W_av[:, 32*o + i] = wa[:, 4*i : 4*i+4] @ wr[:, o]
    w_av = jnp.einsum('hid,do->hoi', wa.reshape(H, N_CAPS, D_INP), wr)
    w_av = w_av.reshape(H, D_OUT * N_CAPS)                                  # [128, 64]
    b_av = jnp.einsum('bid,do->boi', ba.reshape(1, N_CAPS, D_INP), wr)
    b_av = b_av.reshape(1, D_OUT * N_CAPS) + jnp.repeat(br, N_CAPS)[None, :]
    pad_cols = H - N_CAPS - D_OUT * N_CAPS                                  # 32 zero lanes
    wcat = jnp.concatenate([wv, w_av, jnp.zeros((H, pad_cols), jnp.float32)], axis=1)
    bcat = jnp.concatenate([bv, b_av, jnp.zeros((1, pad_cols), jnp.float32)], axis=1)
    return w1, b1, wcat, bcat, beta_use


def reference_raw(x, w1, b1, wa, ba, wv, bv, wr, br, beta_use):
    """Plain-JAX reference of the kernel math (faithful to the torch forward)."""
    h = jax.nn.relu(x @ w1 + b1)
    mu_inp = (h @ wa + ba).reshape(x.shape[0], N_CAPS, 1, D_INP)
    a_inp = h @ wv + bv
    V = jnp.einsum('bicd,dh->bich', mu_inp, wr) + br[None, None, None, :]   # [B,32,1,2]
    f_a = jax.nn.sigmoid(a_inp)
    d_sum = jnp.sum(f_a, axis=-1, keepdims=True)
    a_out = beta_use[0, 0] * d_sum
    mu = jnp.einsum('bi,bich->bh', f_a, V) / (d_sum + EPS)
    prob = jax.nn.softmax(mu, axis=-1)
    return a_out, mu, prob


if __name__ == "__main__":
    key = jax.random.PRNGKey(0)
    kx, kp = jax.random.split(key)
    x = jax.random.normal(kx, (B, D_IN), jnp.float32)
    params = make_params(kp)
    kparams = fold_params(params)

    # Kernel run
    a_out, mu_out, prob = jax.block_until_ready(policy_forward_raw(x, *kparams))
    action_prob, state_capsules = policy_forward(x, kparams)
    jax.block_until_ready((action_prob, state_capsules))

    # Correctness check against plain-JAX reference (original, unfolded params).
    w1, b1, wa, ba, wv, bv, wr, br, beta_use = params
    ra, rm, rp = reference_raw(x, w1, b1, wa, ba, wv, bv, wr, br, beta_use)
    # a_out has no approximate ops -> tight; mu/prob go through the EUP approx
    # reciprocal -> slightly looser tolerance.
    assert jnp.allclose(a_out, ra, atol=1e-4), (a_out, ra)
    assert jnp.allclose(mu_out, rm, atol=5e-3, rtol=5e-3), (mu_out, rm)
    assert jnp.allclose(prob, rp, atol=5e-3, rtol=5e-3), (prob, rp)
    assert action_prob[0].shape == (B, B, D_OUT)
    assert state_capsules[0].shape == (B,)

    # TODO(synk): the PyTorch `.squeeze()` yields shape [2] when batch == 1;
    # this script fixes batch = 2 (shape [B, B, 2]) as in the torch code path.
    print("KERNEL_OK")
</pallas_src>

<mosaic_0001>
module attributes {stable_mosaic.version = 11 : i64} {
  func.func @policy_kernel(%arg0: memref<2x4xf32, #tpu.memory_space<vmem>>, %arg1: memref<4x128xf32, #tpu.memory_space<vmem>>, %arg2: memref<1x128xf32, #tpu.memory_space<vmem>>, %arg3: memref<128x128xf32, #tpu.memory_space<vmem>>, %arg4: memref<1x128xf32, #tpu.memory_space<vmem>>, %arg5: memref<1x1xf32, #tpu.memory_space<smem>>, %arg6: memref<2x128xf32, #tpu.memory_space<vmem>>) attributes {dimension_semantics = [], scalar_prefetch = 0 : i64, scratch_operands = 0 : i64, tpu.core_type = #tpu.core_type<tc>} {
    %c0 = arith.constant 0 : index
    %c0_0 = arith.constant 0 : index
    %0 = vector.load %arg0[%c0, %c0_0] : memref<2x4xf32, #tpu.memory_space<vmem>>, vector<2x4xf32>
    %1 = vector.extract_strided_slice %0 {offsets = [0, 0], sizes = [2, 1], strides = [1, 1]} : vector<2x4xf32> to vector<2x1xf32>
    %c0_1 = arith.constant 0 : index
    %c0_2 = arith.constant 0 : index
    %2 = vector.load %arg1[%c0_1, %c0_2] : memref<4x128xf32, #tpu.memory_space<vmem>>, vector<1x128xf32>
    %3 = vector.broadcast %1 : vector<2x1xf32> to vector<2x128xf32>
    %4 = vector.broadcast %2 : vector<1x128xf32> to vector<2x128xf32>
    %5 = arith.mulf %3, %4 : vector<2x128xf32>
    %6 = vector.extract_strided_slice %0 {offsets = [0, 1], sizes = [2, 1], strides = [1, 1]} : vector<2x4xf32> to vector<2x1xf32>
    %c1 = arith.constant 1 : index
    %c0_3 = arith.constant 0 : index
    %7 = vector.load %arg1[%c1, %c0_3] : memref<4x128xf32, #tpu.memory_space<vmem>>, vector<1x128xf32>
    %8 = vector.broadcast %6 : vector<2x1xf32> to vector<2x128xf32>
    %9 = vector.broadcast %7 : vector<1x128xf32> to vector<2x128xf32>
    %10 = arith.mulf %8, %9 : vector<2x128xf32>
    %11 = arith.addf %5, %10 : vector<2x128xf32>
    %12 = vector.extract_strided_slice %0 {offsets = [0, 2], sizes = [2, 1], strides = [1, 1]} : vector<2x4xf32> to vector<2x1xf32>
    %c2 = arith.constant 2 : index
    %c0_4 = arith.constant 0 : index
    %13 = vector.load %arg1[%c2, %c0_4] : memref<4x128xf32, #tpu.memory_space<vmem>>, vector<1x128xf32>
    %14 = vector.broadcast %12 : vector<2x1xf32> to vector<2x128xf32>
    %15 = vector.broadcast %13 : vector<1x128xf32> to vector<2x128xf32>
    %16 = arith.mulf %14, %15 : vector<2x128xf32>
    %17 = arith.addf %11, %16 : vector<2x128xf32>
    %18 = vector.extract_strided_slice %0 {offsets = [0, 3], sizes = [2, 1], strides = [1, 1]} : vector<2x4xf32> to vector<2x1xf32>
    %c3 = arith.constant 3 : index
    %c0_5 = arith.constant 0 : index
    %19 = vector.load %arg1[%c3, %c0_5] : memref<4x128xf32, #tpu.memory_space<vmem>>, vector<1x128xf32>
    %20 = vector.broadcast %18 : vector<2x1xf32> to vector<2x128xf32>
    %21 = vector.broadcast %19 : vector<1x128xf32> to vector<2x128xf32>
    %22 = arith.mulf %20, %21 : vector<2x128xf32>
    %23 = arith.addf %17, %22 : vector<2x128xf32>
    %c0_6 = arith.constant 0 : index
    %c0_7 = arith.constant 0 : index
    %24 = vector.load %arg2[%c0_6, %c0_7] : memref<1x128xf32, #tpu.memory_space<vmem>>, vector<1x128xf32>
    %25 = vector.broadcast %24 : vector<1x128xf32> to vector<2x128xf32>
    %26 = arith.addf %23, %25 : vector<2x128xf32>
    %cst = arith.constant 0.000000e+00 : f32
    %27 = vector.broadcast %cst : f32 to vector<2x128xf32>
    %28 = arith.maximumf %26, %27 : vector<2x128xf32>
    %c0_8 = arith.constant 0 : index
    %c0_9 = arith.constant 0 : index
    %29 = vector.load %arg3[%c0_8, %c0_9] : memref<128x128xf32, #tpu.memory_space<vmem>>, vector<128x128xf32>
    %cst_10 = arith.constant dense<0.000000e+00> : vector<2x128xf32>
    %30 = tpu.matmul %28, %29, %cst_10 {dimension_numbers = #tpu.dot_dimension_numbers<[1], [0], [0], [1], [0, 0, 1, 1], [], []>} : vector<2x128xf32>, vector<128x128xf32>, vector<2x128xf32> -> vector<2x128xf32>
    %c0_11 = arith.constant 0 : index
    %c0_12 = arith.constant 0 : index
    %31 = vector.load %arg4[%c0_11, %c0_12] : memref<1x128xf32, #tpu.memory_space<vmem>>, vector<1x128xf32>
    %32 = vector.broadcast %31 : vector<1x128xf32> to vector<2x128xf32>
    %33 = arith.addf %30, %32 : vector<2x128xf32>
    %34 = vector.extract_strided_slice %33 {offsets = [0, 0], sizes = [2, 32], strides = [1, 1]} : vector<2x128xf32> to vector<2x32xf32>
    %35 = vector.extract_strided_slice %33 {offsets = [0, 32], sizes = [2, 32], strides = [1, 1]} : vector<2x128xf32> to vector<2x32xf32>
    %36 = vector.extract_strided_slice %33 {offsets = [0, 64], sizes = [2, 32], strides = [1, 1]} : vector<2x128xf32> to vector<2x32xf32>
    %cst_13 = arith.constant 5.000000e-01 : f32
    %37 = vector.broadcast %cst_13 : f32 to vector<2x32xf32>
    %38 = arith.mulf %37, %34 : vector<2x32xf32>
    %39 = math.tanh %38 : vector<2x32xf32>
    %cst_14 = arith.constant 1.000000e+00 : f32
    %40 = vector.broadcast %cst_14 : f32 to vector<2x32xf32>
    %41 = arith.addf %39, %40 : vector<2x32xf32>
    %cst_15 = arith.constant 5.000000e-01 : f32
    %42 = vector.broadcast %cst_15 : f32 to vector<2x32xf32>
    %43 = arith.mulf %42, %41 : vector<2x32xf32>
    %cst_16 = arith.constant dense<0.000000e+00> : vector<2xf32>
    %44 = vector.multi_reduction <add>, %43, %cst_16 [1] : vector<2x32xf32> to vector<2xf32>
    %45 = vector.shape_cast %44 : vector<2xf32> to vector<2x1xf32>
    %c0_17 = arith.constant 0 : index
    %c0_18 = arith.constant 0 : index
    %46 = memref.load %arg5[%c0_17, %c0_18] : memref<1x1xf32, #tpu.memory_space<smem>>
    %47 = vector.broadcast %46 : f32 to vector<2x1xf32>
    %48 = arith.mulf %47, %45 : vector<2x1xf32>
    %cst_19 = arith.constant 9.99999974E-6 : f32
    %49 = vector.broadcast %cst_19 : f32 to vector<2x1xf32>
    %50 = arith.addf %45, %49 : vector<2x1xf32>
    %51 = tpu.reciprocal %50 {approx = true} : vector<2x1xf32> -> vector<2x1xf32>
    %52 = arith.mulf %43, %35 : vector<2x32xf32>
    %cst_20 = arith.constant dense<0.000000e+00> : vector<2xf32>
    %53 = vector.multi_reduction <add>, %52, %cst_20 [1] : vector<2x32xf32> to vector<2xf32>
    %54 = vector.shape_cast %53 : vector<2xf32> to vector<2x1xf32>
    %55 = arith.mulf %54, %51 : vector<2x1xf32>
    %56 = arith.mulf %43, %36 : vector<2x32xf32>
    %cst_21 = arith.constant dense<0.000000e+00> : vector<2xf32>
    %57 = vector.multi_reduction <add>, %56, %cst_21 [1] : vector<2x32xf32> to vector<2xf32>
    %58 = vector.shape_cast %57 : vector<2xf32> to vector<2x1xf32>
    %59 = arith.mulf %58, %51 : vector<2x1xf32>
    %60 = arith.maximumf %55, %59 : vector<2x1xf32>
    %61 = arith.subf %55, %60 : vector<2x1xf32>
    %62 = math.exp %61 : vector<2x1xf32>
    %63 = arith.subf %59, %60 : vector<2x1xf32>
    %64 = math.exp %63 : vector<2x1xf32>
    %65 = arith.addf %62, %64 : vector<2x1xf32>
    %66 = tpu.reciprocal %65 {approx = true} : vector<2x1xf32> -> vector<2x1xf32>
    %67 = arith.mulf %62, %66 : vector<2x1xf32>
    %68 = arith.mulf %64, %66 : vector<2x1xf32>
    %69 = tpu.iota {dimensions = array<i32: 1>} : vector<2x128xi32>
    %c0_i32 = arith.constant 0 : i32
    %70 = vector.broadcast %c0_i32 : i32 to vector<2x128xi32>
    %71 = arith.cmpi eq, %69, %70 : vector<2x128xi32>
    %cst_22 = arith.constant 0.000000e+00 : f32
    %72 = vector.shape_cast %48 : vector<2x1xf32> to vector<2x1xf32>
    %73 = vector.broadcast %72 : vector<2x1xf32> to vector<2x128xf32>
    %74 = vector.broadcast %cst_22 : f32 to vector<2x128xf32>
    %75 = arith.select %71, %73, %74 : vector<2x128xi1>, vector<2x128xf32>
    %c1_i32 = arith.constant 1 : i32
    %76 = vector.broadcast %c1_i32 : i32 to vector<2x128xi32>
    %77 = arith.cmpi eq, %69, %76 : vector<2x128xi32>
    %78 = vector.shape_cast %55 : vector<2x1xf32> to vector<2x1xf32>
    %79 = vector.broadcast %78 : vector<2x1xf32> to vector<2x128xf32>
    %80 = arith.select %77, %79, %75 : vector<2x128xi1>, vector<2x128xf32>
    %c2_i32 = arith.constant 2 : i32
    %81 = vector.broadcast %c2_i32 : i32 to vector<2x128xi32>
    %82 = arith.cmpi eq, %69, %81 : vector<2x128xi32>
    %83 = vector.shape_cast %59 : vector<2x1xf32> to vector<2x1xf32>
    %84 = vector.broadcast %83 : vector<2x1xf32> to vector<2x128xf32>
    %85 = arith.select %82, %84, %80 : vector<2x128xi1>, vector<2x128xf32>
    %c3_i32 = arith.constant 3 : i32
    %86 = vector.broadcast %c3_i32 : i32 to vector<2x128xi32>
    %87 = arith.cmpi eq, %69, %86 : vector<2x128xi32>
    %88 = vector.shape_cast %67 : vector<2x1xf32> to vector<2x1xf32>
    %89 = vector.broadcast %88 : vector<2x1xf32> to vector<2x128xf32>
    %90 = arith.select %87, %89, %85 : vector<2x128xi1>, vector<2x128xf32>
    %c4_i32 = arith.constant 4 : i32
    %91 = vector.broadcast %c4_i32 : i32 to vector<2x128xi32>
    %92 = arith.cmpi eq, %69, %91 : vector<2x128xi32>
    %93 = vector.shape_cast %68 : vector<2x1xf32> to vector<2x1xf32>
    %94 = vector.broadcast %93 : vector<2x1xf32> to vector<2x128xf32>
    %95 = arith.select %92, %94, %90 : vector<2x128xi1>, vector<2x128xf32>
    %c0_23 = arith.constant 0 : index
    %c0_24 = arith.constant 0 : index
    %96 = vector.load %arg6[%c0_23, %c0_24] : memref<2x128xf32, #tpu.memory_space<vmem>>, vector<2x128xf32>
    tpu.vector_store %arg6[%c0_23, %c0_24], %95 {strides = array<i32>} : memref<2x128xf32, #tpu.memory_space<vmem>>, vector<2x128xf32>,
    return
  }
}

</mosaic_0001>

<bundles_post_ra>
// kernel: policy_forward_raw.1
= control target key start
LH: loop header
LB: loop body
LE: loop exit
PB: predicated region body
PF: predicated region fallthrough
CT: control target
= control target key end

     0   :  { %12 = vsyncpa [#allocation4], 0  ;;  %s377_s21 = smov [#allocation3]   ;;  %s463_s0 = inlined_call_operand.vmem [shape: f32[2,4], index: 0, kind: input, shape index: {}]   ;;  %s464_s1 = inlined_call_operand.vmem [shape: f32[4,128], index: 1, kind: input, shape index: {}]   ;;  %s465_s2 = inlined_call_operand.vmem [shape: f32[1,128], index: 2, kind: input, shape index: {}]   ;;  %s466_s3 = inlined_call_operand.hbm [shape: f32[128,128], index: 3, kind: input, shape index: {}]   ;;  %s467_s4 = inlined_call_operand.vmem [shape: f32[1,128], index: 4, kind: input, shape index: {}]   ;;  %s468_s5 = inlined_call_operand.<no memory space> [shape: f32[1,1], index: 5, kind: input, shape index: {}]   ;;  %s469_s6 = inlined_call_operand.vmem [shape: f32[2,128], index: 6, kind: output, shape index: {}]  }
   0x1   :  { %s24_s22 = sshll.u32 %s377_s21, 4  ;;  %s353_s25 = scalar_lea.hbm %s466_s3, 2048  ;;  %s25_s22 = int_to_ptr.vmem [resolvable:$true] %s24_s22 }
   0x2   :  { %p354_p0 = scmp.ne.s32.totalorder %s466_s3, %s353_s25  ;;  %p357_p1 = scmp.lt.u32.totalorder %s353_s25, %s466_s3 }
   0x4   :  { %p359_p2 = pnand %p357_p1, %p354_p0 }
   0x6   :  { %362 = shalt.err (!%p359_p2)
}
   0x7   :  { %s363_s30 = scalar_lea.vmem %s25_s22, 2048  ;;  %p368_p4 = scmp.lt.s32.totalorder %s25_s22, %s25_s22 }
   0x8   :  { %p364_p3 = scmp.ne.s32.totalorder %s25_s22, %s363_s30  ;;  %p369_p5 = scmp.lt.s32.totalorder %s363_s30, %s363_s30 }
   0xa   :  { %p370_p6 = por %p369_p5, %p368_p4 }
   0xc   :  { %p371_p7 = pnand %p370_p6, %p364_p3 }
   0xe   :  { %374 = shalt.err (!%p371_p7)
}
   0xf   :  { %s378_s7 = smov 128   ;;  %s379_s8 = smov 8  }
  0x10   :  { %30 = dma.hbm_to_vmem [thread:$0]  %s466_s3, 2048, %s25_s22, [#allocation4], %s378_s7, %s378_s7, %s379_s8  }
  0x11   :  { %375 = dma.done.wait [#allocation4], 2048  }
  0x12   :  { %376 = vsyncadd [#allocation4], 4294965248  ;;  %v380_v0 = vmov 0   ;;  %v381_v1 = vmov 2   ;;  %v382_v2 = vmov 0.0|0.0   ;;  %v92_v4 = vld [vmem:[#allocation3] sm:$0xff] }
  0x13   :  { %338 = vset.pattern.permute.xlu0 %v380_v0  ;;  %340 = vset.pattern.permute.xlu1 %v381_v1  ;;  %v38_v3 = vld [vmem:[%s463_s0] sm:$0x3]  ;;  %v93_v5 = vld [vmem:[#allocation3 + $0x8] sm:$0xff]  ;;  %v94_v7 = vld [vmem:[#allocation3 + $0x10] sm:$0xff]  ;;  %v383_v12 = vmov 1   ;;  %v384_v13 = vmov 3  }
  0x14   :  { %302 = vmatprep.subr.bf16.mxu0 %v382_v2  ;;  %42 = vperm.xlu0 %338, %v38_v3   ;;  %v303_v6 = vpack.c.bf16 %v93_v5, %v92_v4  ;;  %v95_v8 = vld [vmem:[#allocation3 + $0x18] sm:$0xff]  ;;  %v96_v10 = vld [vmem:[#allocation3 + $0x20] sm:$0xff]  ;;  %v97_v11 = vld [vmem:[#allocation3 + $0x28] sm:$0xff]  ;;  %vm385_vm0 = vmmov 0   ;;  %v386_v20 = vmov 0.0   ;;  %s388_s23 = smov 96  }
  0x15   :  { %63 = vperm.xlu1 %340, %v38_v3   ;;  %v306_v9 = vpack.c.bf16 %v95_v8, %v94_v7  ;;  %v309_v14 = vpack.c.bf16 %v97_v11, %v96_v10  ;;  %v98_v15 = vld [vmem:[#allocation3 + $0x30] sm:$0xff]  ;;  %v99_v16 = vld [vmem:[#allocation3 + $0x38] sm:$0xff]  ;;  %v100_v18 = vld [vmem:[#allocation3 + $0x40] sm:$0xff]  ;;  %299 = vmatprep.mubr.msk.f32.mxu0 %vm385_vm0, %v386_v20  ;;  %vm189_vm1 = vcmask 254976  }
  0x16   :  { %304 = vmatpush3.bf16.msra.mxu0 %v303_v6  ;;  %v312_v17 = vpack.c.bf16 %v99_v16, %v98_v15  ;;  %v101_v19 = vld [vmem:[#allocation3 + $0x48] sm:$0xff]  ;;  %v102_v22 = vld [vmem:[#allocation3 + $0x50] sm:$0xff]  ;;  %v103_v23 = vld [vmem:[#allocation3 + $0x58] sm:$0xff]  ;;  %v226_v15 = vlaneseq  ;;  %v194_v16 = vstv %s468_s5 }
  0x17   :  { %305 = vmatprep.subr.bf16.mxu0 %v382_v2  ;;  %v315_v21 = vpack.c.bf16 %v101_v19, %v100_v18  ;;  %v318_v24 = vpack.c.bf16 %v103_v23, %v102_v22  ;;  %v104_v25 = vld [vmem:[#allocation3 + $0x60] sm:$0xff]  ;;  %v105_v26 = vld [vmem:[#allocation3 + $0x68] sm:$0xff]  ;;  %v106_v28 = vld [vmem:[#allocation3 + $0x70] sm:$0xff] }
  0x18   :  { %339 = vset.pattern.permute.xlu0 %v383_v12  ;;  %v321_v27 = vpack.c.bf16 %v105_v26, %v104_v25  ;;  %v107_v29 = vld [vmem:[#allocation3 + $0x78] sm:$0xff]  ;;  %v244_v33 = vld [vmem:[%s464_s1] ss:$0 sm:$0xff]  ;;  %v245_v34 = vld [vmem:[%s464_s1 + $0x1] ss:$0 sm:$0xff] }
  0x19   :  { %341 = vset.pattern.permute.xlu1 %v384_v13  ;;  %52 = vperm.xlu0 %339, %v38_v3   ;;  %v324_v30 = vpack.c.bf16 %v107_v29, %v106_v28  ;;  %v246_v35 = vld [vmem:[%s464_s1 + $0x2] ss:$0 sm:$0xff]  ;;  %v247_v37 = vld [vmem:[%s464_s1 + $0x3] ss:$0 sm:$0xff]  ;;  %v248_v45 = vld [vmem:[%s465_s2] ss:$0 sm:$0xff] }
  0x1a   :  { %74 = vperm.xlu1 %341, %v38_v3   ;;  %307 = vmatpush3.bf16.msra.mxu0 %v306_v9  ;;  %v249_v49 = vld [vmem:[%s467_s4] ss:$0 sm:$0xff]  ;;  %s387_s1 = smov 64  }
  0x1b   :  { %308 = vmatprep.subr.bf16.mxu0 %v382_v2 }
  0x1d   :  { %342 = vset.pattern.permute.xlu0 %v384_v13 }
  0x1e   :  { %310 = vmatpush3.bf16.msra.mxu0 %v309_v14 }
  0x1f   :  { %311 = vmatprep.subr.bf16.mxu0 %v382_v2 }
  0x22   :  { %313 = vmatpush3.bf16.msra.mxu0 %v312_v17  ;;  %v227_v17 = vand.u32 127, %v226_v15 }
  0x23   :  { %314 = vmatprep.subr.bf16.mxu0 %v382_v2 }
  0x24   :  { %vm228_vm2 = vcmp.eq.s32.totalorder %v227_v17, 0  ;;  %vm230_vm3 = vcmp.eq.s32.totalorder %v227_v17, 1  ;;  %vm232_vm4 = vcmp.eq.s32.totalorder %v227_v17, 2  ;;  %vm234_vm5 = vcmp.eq.s32.totalorder %v227_v17, 3 }
  0x25   :  { %vm236_vm6 = vcmp.eq.s32.totalorder %v227_v17, 4 }
  0x26   :  { %316 = vmatpush3.bf16.msra.mxu0 %v315_v21 }
  0x27   :  { %317 = vmatprep.subr.bf16.mxu0 %v382_v2 }
  0x2a   :  { %319 = vmatpush3.bf16.msra.mxu0 %v318_v24 }
  0x2b   :  { %320 = vmatprep.subr.bf16.mxu0 %v382_v2 }
  0x2e   :  { %322 = vmatpush3.bf16.msra.mxu0 %v321_v27 }
  0x2f   :  { %323 = vmatprep.subr.bf16.mxu0 %v382_v2 }
  0x32   :  { %325 = vmatpush3.bf16.msra.mxu0 %v324_v30 }
  0x93   :  { %v43_v31 = vpop.permute.xlu0 %42 }
  0x94   :  { %v64_v32 = vpop.permute.xlu1 %63  ;;  %v49_v39 = vmul.f32 %v244_v33, %v43_v31 }
  0x95   :  { %v70_v41 = vmul.f32 %v246_v35, %v64_v32 }
  0x98   :  { %v53_v36 = vpop.permute.xlu0 %52 }
  0x99   :  { %v75_v38 = vpop.permute.xlu1 %74  ;;  %v59_v40 = vmul.f32 %v245_v34, %v53_v36 }
  0x9a   :  { %v81_v43 = vmul.f32 %v247_v37, %v75_v38 }
  0x9b   :  { %v60_v42 = vadd.f32 %v59_v40, %v49_v39 }
  0x9d   :  { %v71_v44 = vadd.f32 %v70_v41, %v60_v42 }
  0x9f   :  { %v82_v46 = vadd.f32 %v81_v43, %v71_v44 }
  0xa1   :  { %v90_v47 = vadd.f32 %v248_v45, %v82_v46 }
  0xa3   :  { %v91_v48 = vmax.f32 %v90_v47, 0.0 }
  0xa5   :  { %300 = vmatmul.mubr.f32.vlgmr.msra.gmra.mrb[0].mxu0 %v91_v48 }
 0x178   :  { %v181_v50 = vpop.f32.mrb[0].mxu0 }
 0x179   :  { %v182_v51 = vadd.f32 %v249_v49, %v181_v50  ;;  %v301_v52 = vpop.f32.mrb[1].mxu0 }
 0x17b   :  { %207 = vrot.lane.b32.xlu0 %v182_v51, %s387_s1  ;;  %199 = vrot.lane.b32.xlu1 %v182_v51, %s388_s23  ;;  %v185_v53 = vmul.f32 0.5, %v182_v51 }
 0x17d   :  { %343 = vtanh.f32 %v185_v53 }
 0x187   :  { %v344_v54 = vpop.eup %343 }
 0x188   :  { %v187_v55 = vadd.f32 1.0, %v344_v54 }
 0x18a   :  { %v188_v56 = vmul.f32 0.5, %v187_v55 }
 0x18c   :  { %v190_v57 = vsel %vm189_vm1, %v188_v56, 0.0 }
 0x19f   :  { %191 = vadd.xlane.f32.xlu1 %v190_v57 }
 0x1ed   :  { %v208_v58 = vpop.permute.xlu0 %207  ;;  %v200_v59 = vpop.permute.xlu1 %199 }
 0x1ee   :  { %v202_v60 = vmul.f32 %v200_v59, %v188_v56  ;;  %v210_v61 = vmul.f32 %v208_v58, %v188_v56 }
 0x1f0   :  { %v203_v62 = vsel %vm189_vm1, %v202_v60, 0.0  ;;  %v211_v63 = vsel %vm189_vm1, %v210_v61, 0.0 }
 0x1f1   :  { %204 = vadd.xlane.f32.xlu0 %v203_v62 }
 0x1f5   :  { %212 = vadd.xlane.f32.xlu0 %v211_v63 }
 0x22c   :  { %v192_v0 = vpop.xlane.xlu1 %191 }
 0x22d   :  { %v196_v1 = vadd.f32 1e-05, %v192_v0  ;;  %v195_v18 = vmul.f32 %v194_v16, %v192_v0 }
 0x22f   :  { %345 = vrcp.f32 %v196_v1  ;;  %v229_v20 = vsel %vm228_vm2, %v195_v18, 0.0 }
 0x239   :  { %v346_v3 = vpop.eup %345 }
 0x27e   :  { %v205_v2 = vpop.xlane.xlu0 %204 }
 0x27f   :  { %v206_v5 = vmul.f32 %v346_v3, %v205_v2 }
 0x281   :  { %v231_v21 = vsel %vm230_vm3, %v206_v5, %v229_v20 }
 0x282   :  { %v213_v4 = vpop.xlane.xlu0 %212 }
 0x283   :  { %v214_v6 = vmul.f32 %v346_v3, %v213_v4 }
 0x285   :  { %v215_v7 = vmax.f32 %v206_v5, %v214_v6  ;;  %v233_v24 = vsel %vm232_vm4, %v214_v6, %v231_v21 }
 0x287   :  { %v216_v8 = vsub.f32 %v206_v5, %v215_v7  ;;  %v219_v9 = vsub.f32 %v214_v6, %v215_v7 }
 0x289   :  { %v217_v10 = vmul.f32 1.442695, %v216_v8  ;;  %v220_v11 = vmul.f32 1.442695, %v219_v9 }
 0x28b   :  { %347 = vpow2.f32 %v217_v10 }
 0x28c   :  { %349 = vpow2.f32 %v220_v11 }
 0x295   :  { %v348_v12 = vpop.eup %347 }
 0x296   :  { %v350_v13 = vpop.eup %349 }
 0x297   :  { %v222_v14 = vadd.f32 %v350_v13, %v348_v12 }
 0x299   :  { %351 = vrcp.f32 %v222_v14 }
 0x2a3   :  { %v352_v19 = vpop.eup %351 }
 0x2a4   :  { %v224_v22 = vmul.f32 %v352_v19, %v348_v12  ;;  %v225_v23 = vmul.f32 %v352_v19, %v350_v13 }
 0x2a6   :  { %v235_v25 = vsel %vm234_vm5, %v224_v22, %v233_v24 }
 0x2a7   :  { %v237_v26 = vsel %vm236_vm6, %v225_v23, %v235_v25 }
 0x2a8   :  { %238 = vst [vmem:[%s469_s6] sm:$0x3] %v237_v26 }
 0x2a9   :  { %243 = vsyncpa [#allocation4], 1 }

</bundles_post_ra>
